<compile_context>
chip_gen: v6e
topology: v6e:2x2x1
jax: 0.10.0
libtpu: 0.0.40
codegen_flags: <defaults>
</compile_context>

<pallas_src>
import functools

import jax
import jax.numpy as jnp
from jax.experimental import pallas as pl
from jax.experimental.pallas import tpu as pltpu


_MiB = 1024 * 1024


def _vmem_capacity_bytes() -> int:
    """Physical VMEM per TensorCore; conservative (v7x = 64 MiB) if unknown."""
    try:
        return int(pltpu.get_tpu_info().vmem_capacity_bytes)
    except Exception:
        return 64 * _MiB


def _vmem_cap_limit(cap: int) -> int:
    # Never request the full physical VMEM (leave headroom for compiler
    # internal scratch); ~75% of capacity, at most 100 MiB.
    return min(int(cap * 3 // 4), 100 * _MiB)


def _fused_weight_budget(cap: int) -> int:
    # Per-layer bf16 weight size allowed on the fused (activation-resident)
    # path. The weight is double-buffered, so keep it well under cap.
    return 8 * _MiB if cap <= 64 * _MiB else 28 * _MiB


# --------------------------------------------------------------------------
# Activation epilogue (VPU/EUP, fused into the matmul kernel).
# --------------------------------------------------------------------------
def _apply_activation(y, activation: str):
    if activation == "sigmoid":
        # Single EUP transcendental (tanh) instead of exp + reciprocal.
        return 0.5 * jnp.tanh(0.5 * y) + 0.5
    elif activation == "relu":
        return jnp.maximum(y, 0.0)
    elif activation == "tanh":
        return jnp.tanh(y)
    elif activation == "leaky_relu":
        # torch.nn.LeakyReLU default negative_slope = 0.01
        return jnp.where(y >= 0.0, y, 0.01 * y)
    raise ValueError(f"Unsupported activation function: {activation}")


# --------------------------------------------------------------------------
# Tile pickers.
# --------------------------------------------------------------------------
def _pick_tile(dim: int, preferred: int, align: int) -> int:
    """Largest multiple of `align` <= preferred that divides dim, else full dim."""
    if dim <= preferred:
        return dim
    t = (preferred // align) * align
    while t >= align:
        if dim % t == 0:
            return t
        t -= align
    return dim  # full extent is always legal


def _fused_sizes(B: int, D_in: int, D_out: int, cap: int):
    """Pick the fused-path batch tile and the explicit VMEM limit."""
    cap_limit = _vmem_cap_limit(cap)
    small_vmem = cap <= 64 * _MiB  # v7x-like
    preferred = 512 if small_vmem else 1024
    if small_vmem and B >= 16:
        # Keep >= 2 batch tiles so the second TensorCore gets work (megacore).
        half = (B // 2 // 8) * 8
        if half >= 8:
            preferred = min(preferred, half)
    tm = _pick_tile(B, preferred=preferred, align=8)

    def est(t):
        return (2 * 2 * D_in * D_out    # bf16 weight, double-buffered
                + 2 * 2 * t * D_in      # bf16 x tile, double-buffered
                + 2 * 4 * t * D_out     # f32 out tile, double-buffered
                + 2 * t * D_in)         # bf16 resident activation scratch

    # Shrink tm if the working set would not fit under the VMEM cap.
    while tm > 8 and est(tm) + 2 * _MiB > cap_limit:
        new_tm = _pick_tile(B, preferred=max(8, tm // 2), align=8)
        if new_tm >= tm:
            break
        tm = new_tm

    vmem_limit = min(cap_limit, max(16 * _MiB, est(tm) + 2 * _MiB))
    return tm, vmem_limit


# --------------------------------------------------------------------------
# Fused multi-layer kernel: activations stay resident in VMEM, weights stream.
# Grid = (batch_tiles, num_layers); layer axis innermost ("arbitrary").
# --------------------------------------------------------------------------
def _fused_mlp_kernel(x_ref, w_ref, o_ref, *scratch, activation, num_layers):
    if num_layers == 1:
        # No resident activation needed: x tile -> one matmul -> output.
        y = jnp.dot(x_ref[...], w_ref[...], preferred_element_type=jnp.float32)
        o_ref[...] = _apply_activation(y, activation).astype(o_ref.dtype)
        return

    (act_ref,) = scratch          # bf16 (tm, D) resident activation
    layer = pl.program_id(1)

    @pl.when(layer == 0)
    def _():
        act_ref[...] = x_ref[...]                     # bf16 copy, once per tile

    y = jnp.dot(act_ref[...], w_ref[...], preferred_element_type=jnp.float32)
    y = _apply_activation(y, activation)

    @pl.when(layer < num_layers - 1)
    def _():
        act_ref[...] = y.astype(act_ref.dtype)        # D_in == D_out enforced

    @pl.when(layer == num_layers - 1)
    def _():
        o_ref[...] = y.astype(o_ref.dtype)


def _fused_mlp(x, w_stacked, activation: str):
    """x: [B, D_in] bf16 ; w_stacked: [L, D_in, D_out] bf16 (pre-transposed)."""
    B, D_in = x.shape
    L, _, D_out = w_stacked.shape
    cap = _vmem_capacity_bytes()
    tm, vmem_limit = _fused_sizes(B, D_in, D_out, cap)
    grid = (pl.cdiv(B, tm), L)

    kernel = functools.partial(_fused_mlp_kernel, activation=activation,
                               num_layers=L)
    scratch = [] if L == 1 else [pltpu.VMEM((tm, D_in), jnp.bfloat16)]

    return pl.pallas_call(
        kernel,
        out_shape=jax.ShapeDtypeStruct((B, D_out), jnp.float32),
        grid_spec=pltpu.PrefetchScalarGridSpec(
            num_scalar_prefetch=0,
            grid=grid,
            in_specs=[
                pl.BlockSpec((tm, D_in), lambda m, l: (m, 0)),
                pl.BlockSpec((pl.Squeezed(), D_in, D_out),
                             lambda m, l: (l, 0, 0)),
            ],
            out_specs=pl.BlockSpec((tm, D_out), lambda m, l: (m, 0)),
            scratch_shapes=scratch,
        ),
        compiler_params=pltpu.CompilerParams(
            dimension_semantics=("parallel", "arbitrary"),
            vmem_limit_bytes=vmem_limit,
        ),
    )(x, w_stacked)


# --------------------------------------------------------------------------
# Fallback: single layer, tiled (M, N, K) matmul + activation epilogue.
# Used only when a whole layer weight would not fit comfortably in VMEM.
# TODO(synk): on v7x, a fused variant with an extra D_out grid axis (stream
#             weight column blocks, keep activations resident) would avoid the
#             per-layer HBM activation round-trip this path incurs.
# --------------------------------------------------------------------------
def _tiled_linear_act_kernel(x_ref, w_ref, o_ref, *scratch, activation, nk):
    if nk == 1:
        y = jnp.dot(x_ref[...], w_ref[...], preferred_element_type=jnp.float32)
        o_ref[...] = _apply_activation(y, activation).astype(o_ref.dtype)
        return

    (acc_ref,) = scratch
    k = pl.program_id(2)

    @pl.when(k == 0)
    def _():
        acc_ref[...] = jnp.zeros_like(acc_ref)

    acc_ref[...] += jnp.dot(x_ref[...], w_ref[...],
                            preferred_element_type=jnp.float32)

    @pl.when(k == nk - 1)
    def _():
        o_ref[...] = _apply_activation(acc_ref[...], activation).astype(o_ref.dtype)


def _linear_act_tiled(x, w_t, activation: str, out_dtype):
    """x: [M, K] bf16 ; w_t: [K, N] bf16 (already [in, out])."""
    M, K = x.shape
    _, N = w_t.shape
    tm = _pick_tile(M, preferred=512, align=8)
    tn = _pick_tile(N, preferred=512, align=128)
    tk = _pick_tile(K, preferred=1024, align=128)
    nk = K // tk
    grid = (M // tm, N // tn, nk)

    cap = _vmem_capacity_bytes()
    out_bytes = jnp.dtype(out_dtype).itemsize
    est = (2 * 2 * tm * tk + 2 * 2 * tk * tn + 2 * out_bytes * tm * tn
           + (4 * tm * tn if nk > 1 else 0))
    vmem_limit = min(_vmem_cap_limit(cap), max(16 * _MiB, est + 2 * _MiB))

    kernel = functools.partial(_tiled_linear_act_kernel,
                               activation=activation, nk=nk)
    scratch = [] if nk == 1 else [pltpu.VMEM((tm, tn), jnp.float32)]

    return pl.pallas_call(
        kernel,
        out_shape=jax.ShapeDtypeStruct((M, N), out_dtype),
        grid_spec=pltpu.PrefetchScalarGridSpec(
            num_scalar_prefetch=0,
            grid=grid,
            in_specs=[
                pl.BlockSpec((tm, tk), lambda i, j, k: (i, k)),
                pl.BlockSpec((tk, tn), lambda i, j, k: (k, j)),
            ],
            out_specs=pl.BlockSpec((tm, tn), lambda i, j, k: (i, j)),
            scratch_shapes=scratch,
        ),
        compiler_params=pltpu.CompilerParams(
            dimension_semantics=("parallel", "parallel", "arbitrary"),
            vmem_limit_bytes=vmem_limit,
        ),
    )(x, w_t)


# --------------------------------------------------------------------------
# Feedforward module (parameter setup + dispatch are plain-JAX glue).
# --------------------------------------------------------------------------
class Feedforward:
    def __init__(self, input_size: int, output_size: int, num_layers: int = 1,
                 activation: str = "sigmoid", *, key=None):
        valid = ("sigmoid", "relu", "tanh", "leaky_relu")
        if activation not in valid:
            raise ValueError(
                f"Unsupported activation function: {activation}. "
                f"Options are {list(valid)}."
            )
        if num_layers > 1 and input_size != output_size:
            # Same structural constraint as the PyTorch module: every layer is
            # Linear(input_size, output_size), so chaining needs equal sizes.
            raise ValueError("num_layers > 1 requires input_size == output_size")
        self.input_size = input_size
        self.output_size = output_size
        self.num_layers = num_layers
        self.activation = activation

        if key is None:
            key = jax.random.PRNGKey(0)
        # Deterministic init mimicking torch.nn.Linear: U(-1/sqrt(in), 1/sqrt(in)),
        # generated in torch layout [out, in], transposed ONCE to [in, out],
        # stacked, stored bf16 (MXU-native operand dtype).
        bound = 1.0 / (input_size ** 0.5)
        keys = jax.random.split(key, num_layers)
        ws = []
        for k in keys:
            w_torch = jax.random.uniform(
                k, (output_size, input_size), dtype=jnp.float32,
                minval=-bound, maxval=bound,
            )
            ws.append(w_torch.T)                        # [in, out]
        self.w_stacked = jnp.stack(ws, axis=0).astype(jnp.bfloat16)

    def __call__(self, x):
        # Single up-front cast: all layer inputs are bf16 (matches reference,
        # halves HBM traffic for x / inter-layer activations).
        x = jnp.asarray(x, jnp.bfloat16)
        cap = _vmem_capacity_bytes()
        w_bytes = 2 * self.input_size * self.output_size   # one bf16 layer weight
        if w_bytes <= _fused_weight_budget(cap):
            # Fused path: one kernel for all layers, activations VMEM-resident.
            return _fused_mlp(x, self.w_stacked, self.activation)
        # Fallback for very large feature dims: per-layer tiled matmul.
        # Intermediate layers emit bf16; only the final layer emits fp32.
        for layer in range(self.num_layers):
            last = (layer == self.num_layers - 1)
            x = _linear_act_tiled(
                x, self.w_stacked[layer], self.activation,
                out_dtype=jnp.float32 if last else jnp.bfloat16)
        return x


# --------------------------------------------------------------------------
# Pure-JAX reference mirroring the kernel math (bf16 operands, f32 accumulate).
# --------------------------------------------------------------------------
def _reference(x, w_stacked, activation):
    def act(v):
        if activation == "sigmoid":
            return 1.0 / (1.0 + jnp.exp(-v))
        if activation == "relu":
            return jnp.maximum(v, 0.0)
        if activation == "tanh":
            return jnp.tanh(v)
        return jnp.where(v >= 0.0, v, 0.01 * v)

    h = jnp.asarray(x, jnp.float32)
    for layer in range(w_stacked.shape[0]):
        y = jnp.dot(h.astype(jnp.bfloat16), w_stacked[layer],
                    preferred_element_type=jnp.float32)
        h = act(y)
    return h


if __name__ == "__main__":
    key = jax.random.PRNGKey(0)
    k_x, k_w = jax.random.split(key)

    # Test 1: two chained layers with sigmoid (fused multi-layer path).
    batch, input_size, output_size, num_layers = 8, 32, 32, 2
    x = jax.random.normal(k_x, (batch, input_size), dtype=jnp.float32)
    model = Feedforward(input_size, output_size, num_layers=num_layers,
                        activation="sigmoid", key=k_w)
    out = jax.block_until_ready(model(x))
    ref = _reference(x, model.w_stacked, "sigmoid")
    assert out.shape == (batch, output_size)
    assert jnp.allclose(out, ref, atol=2e-3, rtol=2e-3), "sigmoid mismatch vs reference"

    # Test 2: single layer, differing in/out sizes, relu.
    model2 = Feedforward(32, 64, num_layers=1, activation="relu", key=k_w)
    out2 = jax.block_until_ready(model2(x))
    ref2 = _reference(x, model2.w_stacked, "relu")
    assert out2.shape == (batch, 64)
    assert jnp.allclose(out2, ref2, atol=2e-3, rtol=2e-3), "relu mismatch vs reference"

    # Test 3: three chained layers with tanh (fused path, act scratch reused).
    model3 = Feedforward(32, 32, num_layers=3, activation="tanh", key=k_w)
    out3 = jax.block_until_ready(model3(x))
    ref3 = _reference(x, model3.w_stacked, "tanh")
    assert out3.shape == (batch, 32)
    assert jnp.allclose(out3, ref3, atol=2e-3, rtol=2e-3), "tanh mismatch vs reference"

    print("KERNEL_OK")
</pallas_src>

<mosaic_0001>
module attributes {stable_mosaic.version = 11 : i64} {
  func.func @_fused_mlp_kernel(%arg0: i32, %arg1: i32, %arg2: memref<8x32xbf16, #tpu.memory_space<vmem>>, %arg3: memref<1x32x32xbf16, #tpu.memory_space<vmem>>, %arg4: memref<8x32xf32, #tpu.memory_space<vmem>>, %arg5: memref<8x32xbf16, #tpu.memory_space<vmem>>) attributes {dimension_semantics = [#tpu.dimension_semantics<parallel>, #tpu.dimension_semantics<arbitrary>], iteration_bounds = array<i64: 1, 2>, scalar_prefetch = 0 : i64, scratch_operands = 1 : i64, tpu.core_type = #tpu.core_type<tc>, window_params = [{transform_indices = @transform_0, window_bounds = array<i64: 8, 32>}, {transform_indices = @transform_1, window_bounds = array<i64: 1, 32, 32>}, {transform_indices = @transform_2, window_bounds = array<i64: 8, 32>}]} {
    %c0_i32 = arith.constant 0 : i32
    %0 = arith.cmpi eq, %arg1, %c0_i32 : i32
    %1 = arith.extui %0 : i1 to i32
    %c0_i32_0 = arith.constant 0 : i32
    %2 = arith.cmpi ne, %1, %c0_i32_0 : i32
    scf.if %2 {
      %c0_11 = arith.constant 0 : index
      %c0_12 = arith.constant 0 : index
      %20 = vector.load %arg2[%c0_11, %c0_12] : memref<8x32xbf16, #tpu.memory_space<vmem>>, vector<8x32xbf16>
      %c0_13 = arith.constant 0 : index
      %c0_14 = arith.constant 0 : index
      %21 = vector.load %arg5[%c0_13, %c0_14] : memref<8x32xbf16, #tpu.memory_space<vmem>>, vector<8x32xbf16>
      tpu.vector_store %arg5[%c0_13, %c0_14], %20 {strides = array<i32>} : memref<8x32xbf16, #tpu.memory_space<vmem>>, vector<8x32xbf16>,
    } else {
    }
    %c0 = arith.constant 0 : index
    %c0_1 = arith.constant 0 : index
    %3 = vector.load %arg5[%c0, %c0_1] : memref<8x32xbf16, #tpu.memory_space<vmem>>, vector<8x32xbf16>
    %c0_2 = arith.constant 0 : index
    %c0_3 = arith.constant 0 : index
    %c0_4 = arith.constant 0 : index
    %4 = vector.load %arg3[%c0_2, %c0_3, %c0_4] : memref<1x32x32xbf16, #tpu.memory_space<vmem>>, vector<1x32x32xbf16>
    %5 = vector.shape_cast %4 : vector<1x32x32xbf16> to vector<32x32xbf16>
    %cst = arith.constant dense<0.000000e+00> : vector<8x32xf32>
    %6 = tpu.matmul %3, %5, %cst {dimension_numbers = #tpu.dot_dimension_numbers<[1], [0], [0], [1], [0, 0, 1, 1], [], []>} : vector<8x32xbf16>, vector<32x32xbf16>, vector<8x32xf32> -> vector<8x32xf32>
    %cst_5 = arith.constant 5.000000e-01 : f32
    %7 = vector.broadcast %cst_5 : f32 to vector<8x32xf32>
    %8 = arith.mulf %7, %6 : vector<8x32xf32>
    %9 = math.tanh %8 : vector<8x32xf32>
    %cst_6 = arith.constant 5.000000e-01 : f32
    %10 = vector.broadcast %cst_6 : f32 to vector<8x32xf32>
    %11 = arith.mulf %10, %9 : vector<8x32xf32>
    %cst_7 = arith.constant 5.000000e-01 : f32
    %12 = vector.broadcast %cst_7 : f32 to vector<8x32xf32>
    %13 = arith.addf %11, %12 : vector<8x32xf32>
    %c1_i32 = arith.constant 1 : i32
    %14 = arith.cmpi slt, %arg1, %c1_i32 : i32
    %15 = arith.extui %14 : i1 to i32
    %c0_i32_8 = arith.constant 0 : i32
    %16 = arith.cmpi ne, %15, %c0_i32_8 : i32
    scf.if %16 {
      %20 = arith.truncf %13 : vector<8x32xf32> to vector<8x32xbf16>
      %c0_11 = arith.constant 0 : index
      %c0_12 = arith.constant 0 : index
      %21 = vector.load %arg5[%c0_11, %c0_12] : memref<8x32xbf16, #tpu.memory_space<vmem>>, vector<8x32xbf16>
      tpu.vector_store %arg5[%c0_11, %c0_12], %20 {strides = array<i32>} : memref<8x32xbf16, #tpu.memory_space<vmem>>, vector<8x32xbf16>,
    } else {
    }
    %c1_i32_9 = arith.constant 1 : i32
    %17 = arith.cmpi eq, %arg1, %c1_i32_9 : i32
    %18 = arith.extui %17 : i1 to i32
    %c0_i32_10 = arith.constant 0 : i32
    %19 = arith.cmpi ne, %18, %c0_i32_10 : i32
    scf.if %19 {
      %c0_11 = arith.constant 0 : index
      %c0_12 = arith.constant 0 : index
      %20 = vector.load %arg4[%c0_11, %c0_12] : memref<8x32xf32, #tpu.memory_space<vmem>>, vector<8x32xf32>
      tpu.vector_store %arg4[%c0_11, %c0_12], %13 {strides = array<i32>} : memref<8x32xf32, #tpu.memory_space<vmem>>, vector<8x32xf32>,
    } else {
    }
    return
  }
  func.func @transform_0(%arg0: i32, %arg1: i32) -> (i32, i32) {
    %c0_i32 = arith.constant 0 : i32
    %c0_i32_0 = arith.constant 0 : i32
    return %arg0, %c0_i32 : i32, i32
  }
  func.func @transform_1(%arg0: i32, %arg1: i32) -> (i32, i32, i32) {
    %c0_i32 = arith.constant 0 : i32
    %c0_i32_0 = arith.constant 0 : i32
    %c0_i32_1 = arith.constant 0 : i32
    return %arg1, %c0_i32, %c0_i32_0 : i32, i32, i32
  }
  func.func @transform_2(%arg0: i32, %arg1: i32) -> (i32, i32) {
    %c0_i32 = arith.constant 0 : i32
    %c0_i32_0 = arith.constant 0 : i32
    return %arg0, %c0_i32 : i32, i32
  }
}

</mosaic_0001>

<bundles_post_ra>
// kernel: tpu_custom_call.1
= control target key start
LH: loop header
LB: loop body
LE: loop exit
PB: predicated region body
PF: predicated region fallthrough
CT: control target
= control target key end

     0   :  { %7 = vsyncpa [#allocation4], 0  ;;  %s769_s0 = inlined_call_operand.hbm [shape: bf16[8,32], index: 0, kind: input, shape index: {}]   ;;  %s770_s1 = inlined_call_operand.hbm [shape: bf16[2,32,32], index: 1, kind: input, shape index: {}]   ;;  %s771_s2 = inlined_call_operand.hbm [shape: f32[8,32], index: 2, kind: output, shape index: {}]  }
   0x1   :  { %8 = vsyncpa [#allocation7], 0 }
   0x2   :  { %10 = vsyncpa [#allocation7 + $0x1], 0 }
   0x3   :  { %11 = vsyncpa [#allocation5], 0  ;;  %s629_s9 = smov 0   ;;  %s631_s10 = smov 0  }
   0x4   :  { %s633_s11 = smov 0   ;;  %s635_s12 = smov 0  }
   0x5   :  { %s637_s13 = smov 0   ;;  %s639_s14 = smov 0  }
   0x6 LB: > { %s356_s15 = sadd.s32 4294967295, %s605_s14   ;;  %s62_s16 = sadd.s32 1, %s593_s11  ;;  %s605_s14 = sphi %s639_s14, %s17_s14   ;;  %s601_s13 = sphi %s637_s13, %s786_s13   ;;  %s597_s12 = sphi %s635_s12, %s785_s12   ;;  %s593_s11 = sphi %s633_s11, %s784_s11   ;;  %s589_s10 = sphi %s631_s10, %s783_s10   ;;  %s585_s9 = sphi %s629_s9, %s782_s9  }
   0x7   : > { %p69_p0 = scmp.ne.s32.totalorder %s593_s11, %s589_s10  ;;  %p70_p1 = scmp.eq.s32.totalorder %s605_s14, 0 }
   0x8   : > { %p75_p2 = scmp.ne.s32.totalorder %s589_s10, %s585_s9  ;;  %p665_p3 = scmp.eq.s32.totalorder %s356_s15, 0 }
   0x9   : > { %p71_p4 = por %p70_p1, %p69_p0  ;;  %p357_p5 = scmp.ge.s32.totalorder %s605_s14, 1 }
   0xa   : > { %p672_p6 = por %p665_p3, %p75_p2  ;;  %p112_p7 = scmp.lt.s32.totalorder %s605_s14, 3 }
   0xb   : > { %s607_s20 = smov [#allocation3]   ;;  %p407_p10 = scmp.lt.s32.totalorder %s605_s14, 2 }
   0xc   : > { %s775_s18 = scalar_select %p672_p6, 1, 0 }
   0xd   : > { %p677_p8 = pnand %p357_p5, %p112_p7  ;;  %s127_s21 = sshll.u32 %s607_s20, 4  ;;  %s128_s21 = int_to_ptr.vmem [resolvable:$true] %s127_s21 }
   0xe   : > { %s138_s22 = sand.u32 1, %s593_s11   ;;  %p687_p12 = pnand %p407_p10, %p71_p4 }
   0xf   : > { %s776_s19 = scalar_select %p677_p8, 1, 0 }
  0x10   : > { %p398_p9 = pneg %p677_p8  ;;  %s480_s24 = scalar_lea.vmem %s128_s21, 64 }
  0x11   : > { %p481_p0 = scmp.ne.s32.totalorder %s128_s21, %s480_s24  ;;  %p488_p5 = scmp.lt.s32.totalorder %s128_s21, %s128_s21 }
  0x12   : > { %p399_p11 = pnand %p398_p9, %p665_p3  ;;  %p489_p7 = scmp.lt.s32.totalorder %s480_s24, %s480_s24 }
  0x14   : > { %p471_p13 = pneg %p399_p11  ;;  %p490_p6 = por %p489_p7, %p488_p5 }
  0x16   : > { %p483_p1 = pnand %p481_p0, %p471_p13 }
  0x18   : > { %p484_p2 = pneg %p483_p1 }
  0x1a   : > { %p491_p8 = pnand %p490_p6, %p484_p2 }
  0x1c   : > { %494 = shalt.err (!%p491_p8)
}
  0x1d   : > { %401 = dma.hbm_to_vmem [thread:$0]  (!%p399_p11), %s769_s0, 64, %s128_s21, [#allocation4]  }
  0x1e   : > { %s26_s27 = sadd.s32 1, %s601_s13  ;;  %s360_s28 = sshll.u32 %s138_s22, 4 }
  0x1f   : > { %p27_p4 = scmp.ge.s32.totalorder %s26_s27, 2  ;;  %s376_s29 = sshll.u32 %s601_s13, 8 }
  0x20   : > { %s142_s30 = scalar_lea.vmem [#allocation6], %s360_s28  ;;  %s148_s6 = scalar_lea.hbm %s770_s1, %s376_s29 }
  0x21   : > { %s149_s3 = sshll.u32 %s142_s30, 4  ;;  %s788_s27 = smov (%p27_p4, %s26_s27), 0  ;;  %s150_s3 = int_to_ptr.vmem [resolvable:$true] %s149_s3 }
  0x22   : > { %s59_s7 = ssub.s32 %s601_s13, %s788_s27  ;;  %s139_s9 = scalar_lea.sflag [#allocation7], %s138_s22 }
  0x23   : > { %p703_p6 = scmp.eq.s32.totalorder %s59_s7, 0  ;;  %p497_p8 = pneg %p687_p12 }
  0x24   : > { %s508_s20 = scalar_lea.vmem %s150_s3, 256  ;;  %s608_s21 = smov [#allocation6]  }
  0x25   : > { %p509_p9 = scmp.ne.s32.totalorder %s150_s3, %s508_s20  ;;  %s513_s24 = sshll.u32 %s608_s21, 4  ;;  %s514_s24 = int_to_ptr.vmem [resolvable:$false] %s513_s24 }
  0x26   : > { %s515_s25 = scalar_lea.vmem %s514_s24, 512  ;;  %p516_p13 = scmp.lt.s32.totalorder %s150_s3, %s514_s24 }
  0x27   : > { %p511_p10 = pnand %p509_p9, %p497_p8  ;;  %p517_p0 = scmp.lt.s32.totalorder %s515_s25, %s508_s20 }
  0x29   : > { %p512_p11 = pneg %p511_p10  ;;  %p518_p1 = por %p517_p0, %p516_p13 }
  0x2b   : > { %p519_p2 = pnand %p518_p1, %p512_p11 }
  0x2d   : > { %522 = shalt.err (!%p519_p2)
}
  0x2e   : > { %s609_s26 = smov 64   ;;  %s610_s22 = smov 4  }
  0x2f   : > { %405 = dma.hbm_to_vmem [thread:$0]  (!%p687_p12), %s148_s6, 256, %s150_s3, %s139_s9, %s609_s26, %s609_s26, %s610_s22  }
  0x30   : > { %s716_s28 = scalar_select %p703_p6, %s593_s11, %s62_s16  }
  0x31   : > { %p779_p5 = scmp.ne.s32.totalorder %s776_s19, 0 }
  0x33   : > { %161 = sbr.rel (%p779_p5) target bundleno = 318 (0x13e), region = 28 }
  0x38   : > { %572 = dma.done.wait (%p665_p3), [#allocation4], 64  }
  0x39   : > { %574 = vsyncadd (%p665_p3), [#allocation4], 4294967232  ;;  %s167_s29 = sand.u32 1, %s589_s10   ;;  %p780_p12 = scmp.ne.s32.totalorder %s775_s18, 0 }
  0x3a   : > { %s365_s30 = sshll.u32 %s167_s29, 4  ;;  %s168_s4 = scalar_lea.sflag [#allocation7], %s167_s29 }
  0x3b   : > { %s171_s23 = scalar_lea.vmem [#allocation6], %s365_s30 }
  0x3c   : > { %576 = dma.done.wait (%p780_p12), %s168_s4, 256  }
  0x3d   : > { %578 = vsyncadd (%p780_p12), %s168_s4, 4294967040  ;;  %p366_p7 = scmp.ne.s32.totalorder %s597_s12, 0 }
  0x3f   : > { %191 = sbr.rel (%p366_p7) target bundleno = 70 (0x46), region = 40 }
  0x44   : > { %v192_v0 = vld [vmem:[#allocation3] sm:$0xf]  ;;  %vm193_vm0 = vcmask 257024  }
  0x45   : > { %194 = vst.msk [vmem:[#allocation2] sm:$0xf] %vm193_vm0, %v192_v0 }
  0x46 PF: > { %v465_v1 = vld [vmem:[%s171_s23 + $0x8] sm:$0xff]   ;;  %v611_v2 = vmov 0.0   ;;  %v466_v3 = vld [vmem:[%s171_s23] sm:$0xff]   ;;  %vm612_vm1 = vmmov 0   ;;  %vm212_vm2 = vcmask 261120   ;;  %p370_p3 = scmp.ge.s32.totalorder %s597_s12, 1 }
  0x47   : > { %380 = vmatprep.subr.bf16.mxu0 %v611_v2  ;;  %384 = vmatprep.mubr.msk.bf16.mxu0 %vm612_vm1, %v611_v2 }
  0x48   : > { %381 = vmatpush3.bf16.msra.mxu0 %v465_v1 }
  0x49   : > { %382 = vmatprep.subr.bf16.mxu0 %v611_v2 }
  0x4c   : > { %383 = vmatpush3.bf16.msra.mxu0 %v466_v3  ;;  %v195_v4 = vld [vmem:[#allocation2] sm:$0xf] }
  0x4f   : > { %385 = vmatmul.mubr.msk.bf16.vlgmr.msra.gmra.mxu0 %vm212_vm2, %v195_v4 }
 0x10f   : > { %v250_v5 = vpop.f32.mrf.mxu0 }
 0x110   : > { %v256_v6 = vmul.f32 0.5, %v250_v5 }
 0x111   : > { %v386_v7 = vpop.f32.mrf.mxu0 }
 0x112   : > { %467 = vtanh.f32 %v256_v6 }
 0x113   : > { %v253_v8 = vpop.f32.mrf.mxu0 }
 0x115   : > { %v387_v9 = vpop.f32.mrf.mxu0 }
 0x11e   : > { %263 = sbr.rel (%p370_p3) target bundleno = 295 (0x127), region = 44 }
 0x11f   : > { %v468_v10 = vpop.eup %467 }
 0x120   : > { %v258_v11 = vmul.f32 0.5, %v468_v10 }
 0x122   : > { %v259_v12 = vadd.f32 0.5, %v258_v11 }
 0x123   : > { %vm265_vm3 = vcmask 257024  }
 0x124   : > { %v264_v13 = vpack.c.bf16 %v259_v12, %v259_v12 }
 0x126   : > { %266 = vst.msk [vmem:[#allocation2] sm:$0xf] %vm265_vm3, %v264_v13 }
 0x127 PF: > { %p371_p4 = scmp.ne.s32.totalorder %s597_s12, 1 }
 0x129   : > { %270 = sbr.rel (%p371_p4) target bundleno = 303 (0x12f), region = 48 }
 0x12e   : > { %271 = vst.msk [vmem:[#allocation8] sm:$0xff] %vm212_vm2, %v259_v12 }
 0x12f PF: > { %p736_p6 = scmp.eq.s32.totalorder %s356_s15, 1  ;;  %s613_s17 = smov [#allocation8]  }
 0x130   : > { %s281_s18 = sshll.u32 %s613_s17, 4  ;;  %s282_s18 = int_to_ptr.vmem [resolvable:$true] %s281_s18 }
 0x131   : > { %s523_s19 = scalar_lea.vmem %s282_s18, 128  ;;  %p530_p11 = scmp.lt.s32.totalorder %s282_s18, %s282_s18 }
 0x132   : > { %p524_p8 = scmp.ne.s32.totalorder %s282_s18, %s523_s19  ;;  %p531_p13 = scmp.lt.s32.totalorder %s523_s19, %s523_s19 }
 0x134   : > { %p525_p9 = pnand %p524_p8, %p736_p6  ;;  %p532_p0 = por %p531_p13, %p530_p11 }
 0x136   : > { %p526_p10 = pneg %p525_p9 }
 0x138   : > { %p533_p1 = pnand %p532_p0, %p526_p10 }
 0x13a   : > { %536 = shalt.err (!%p533_p1)
}
 0x13b   : > { %395 = dma.vmem_to_hbm [thread:$0]  (%p736_p6), %s282_s18, 128, %s771_s2, [#allocation5]  }
 0x13c   : > { %580 = dma.done.wait (%p736_p6), [#allocation5], 128  }
 0x13d   : > { %582 = vsyncadd (%p736_p6), [#allocation5], 4294967168 }
 0x13e PF: > { %s17_s14 = sadd.s32 1, %s605_s14   ;;  %s782_s9 = smov %s589_s10 }
 0x13f   : > { %p14_p2 = scmp.ge.s32.totalorder %s17_s14, 4   ;;  %s783_s10 = smov %s593_s11 }
 0x140   : > { %s784_s11 = smov %s716_s28  ;;  %s785_s12 = smov %s601_s13 }
 0x141   : > { %s786_s13 = smov %s788_s27  ;;  %16 = sbr.rel (!%p14_p2) target bundleno = 6 (0x6), region = 84 }
 0x146   :  { %294 = vsyncpa [#allocation4], 1 }
 0x147   :  { %296 = vsyncpa [#allocation4 + $0x1], 1 }
 0x148   :  { %297 = vsyncpa [#allocation7], 1 }
 0x149   :  { %299 = vsyncpa [#allocation7 + $0x1], 1 }
 0x14a   :  { %300 = vsyncpa [#allocation5], 1 }
 0x14b   :  { %302 = vsyncpa [#allocation5 + $0x1], 1 }

</bundles_post_ra>
